<compile_context>
chip_gen: v7x
topology: tpu7x:2x2x1
jax: 0.10.0
libtpu: 0.0.40
codegen_flags: <defaults>
</compile_context>

<pallas_src>
import functools

import jax
import jax.numpy as jnp
from jax import lax
from jax.experimental import pallas as pl
from jax.experimental.pallas import tpu as pltpu

BN_EPS = 1e-5
# eval-mode BatchNorm with default init (gamma=1, beta=0, mean=0, var=1), folded into W
BN_SCALE = 1.0 / (1.0 + BN_EPS) ** 0.5

VMEM_LIMIT = 48 * 1024 * 1024   # safe headroom on v7x's 64 MiB/TC (limit, not allocation)


def _round_up(x, m):
    return -(-x // m) * m


# ----------------------------- Pallas kernels --------------------------------

def _gemm_kernel(a_ref, w_ref, b_ref, o_ref, *, relu):
    # bf16 x bf16 -> f32 MXU accumulation; epilogue in f32.
    acc = jnp.dot(a_ref[...], w_ref[...], preferred_element_type=jnp.float32)
    acc = acc + b_ref[...]
    if relu:
        acc = jnp.maximum(acc, 0.0)
    o_ref[...] = acc.astype(o_ref.dtype)


def _gemm_res_kernel(a_ref, w_ref, b_ref, r_ref, o_ref, *, relu):
    # same, with the bottleneck residual add fused before the ReLU.
    acc = jnp.dot(a_ref[...], w_ref[...], preferred_element_type=jnp.float32)
    acc = acc + b_ref[...] + r_ref[...].astype(jnp.float32)
    if relu:
        acc = jnp.maximum(acc, 0.0)
    o_ref[...] = acc.astype(o_ref.dtype)


@functools.lru_cache(maxsize=None)
def _gemm_call(M, K, N, relu, has_res, out_f32):
    # M tiling: 128-row tiles for large M, one 16-aligned tile otherwise.
    if M > 128:
        Mp, tm = _round_up(M, 128), 128
    else:
        Mp = _round_up(M, 16)
        tm = Mp
    m_blocks = Mp // tm
    # N tiling: cap at 256 lanes (bounded weight tile / vreg pressure on v6e).
    if N % 256 == 0:
        tn = 256
    elif N % 128 == 0:
        tn = 128
    else:
        tn = N   # full-N block (e.g. N=64 or N=3)
    # v7x has 2 TensorCores: expose >=2 parallel grid blocks when M gives only one.
    if m_blocks == 1 and N // tn == 1 and tn % 256 == 0:
        tn //= 2

    out_dtype = jnp.float32 if out_f32 else jnp.bfloat16
    in_specs = [
        pl.BlockSpec((tm, K), lambda i, j: (i, 0)),
        pl.BlockSpec((K, tn), lambda i, j: (0, j)),
        pl.BlockSpec((1, tn), lambda i, j: (0, j)),
    ]
    if has_res:
        in_specs.append(pl.BlockSpec((tm, tn), lambda i, j: (i, j)))
        kernel = functools.partial(_gemm_res_kernel, relu=relu)
    else:
        kernel = functools.partial(_gemm_kernel, relu=relu)

    call = pl.pallas_call(
        kernel,
        out_shape=jax.ShapeDtypeStruct((Mp, N), out_dtype),
        grid=(m_blocks, N // tn),
        in_specs=in_specs,
        out_specs=pl.BlockSpec((tm, tn), lambda i, j: (i, j)),
        compiler_params=pltpu.CompilerParams(
            dimension_semantics=("parallel", "parallel"),
            vmem_limit_bytes=VMEM_LIMIT,
        ),
    )
    return jax.jit(call), Mp


def gemm_bias(a, w, bias, relu, residual=None, out_f32=False):
    M, K = a.shape
    N = w.shape[1]
    fn, Mp = _gemm_call(int(M), int(K), int(N), bool(relu),
                        residual is not None, bool(out_f32))
    a = a.astype(jnp.bfloat16)
    if Mp != M:
        a = jnp.pad(a, ((0, Mp - M), (0, 0)))
    args = [a, w.astype(jnp.bfloat16), bias.astype(jnp.float32)]
    if residual is not None:
        r = residual.astype(jnp.bfloat16)
        if Mp != M:
            r = jnp.pad(r, ((0, Mp - M), (0, 0)))
        args.append(r)
    out = fn(*args)
    return out[:M] if Mp != M else out


def _max9_kernel(*refs):
    o_ref = refs[-1]
    m = refs[0][...].astype(jnp.float32)      # f32 compare path (v5e-safe)
    for r in refs[1:9]:
        m = jnp.maximum(m, r[...].astype(jnp.float32))
    o_ref[...] = m.astype(o_ref.dtype)


@functools.lru_cache(maxsize=None)
def _max9_call(shape):
    return jax.jit(pl.pallas_call(
        _max9_kernel, out_shape=jax.ShapeDtypeStruct(shape, jnp.bfloat16)))


def maxpool_3x3_s2_p1(x):
    # TODO(synk): still built from 9 strided views gathered outside the kernel; a
    # single-read Pallas kernel over the padded input would cut the glue traffic further.
    n, h, w, c = x.shape
    ho = (h + 2 - 3) // 2 + 1
    wo = (w + 2 - 3) // 2 + 1
    xp = jnp.pad(x, ((0, 0), (1, 1), (1, 1), (0, 0)), constant_values=-jnp.inf)
    wins = []
    for i in range(3):
        for j in range(3):
            wins.append(lax.slice(
                xp, (0, i, j, 0),
                (n, i + (ho - 1) * 2 + 1, j + (wo - 1) * 2 + 1, c),
                (1, 2, 2, 1)))
    return _max9_call((n, ho, wo, c))(*wins)


def _l2norm_kernel(x_ref, o_ref):
    x = x_ref[...].astype(jnp.float32)
    nrm = jnp.sqrt(jnp.sum(x * x, axis=-1, keepdims=True))
    o_ref[...] = (x / jnp.maximum(nrm, 1e-12)).astype(o_ref.dtype)   # torch eps=1e-12


@functools.lru_cache(maxsize=None)
def _l2norm_call(shape):
    return jax.jit(pl.pallas_call(
        _l2norm_kernel, out_shape=jax.ShapeDtypeStruct(shape, jnp.bfloat16)))


def l2_normalize(x):  # NHWC, normalize over C (== torch dim=1 in NCHW)
    n, h, w, c = x.shape
    y = _l2norm_call((n * h * w, c))(x.reshape(n * h * w, c))
    return y.reshape(n, h, w, c)


# ----------------------------- conv wrappers ----------------------------------

def conv2d(x, wb, stride, padding, relu, residual=None, out_f32=False):
    """x: NHWC bf16; weight (kh, kw, Cin, Cout) with BN scale pre-folded.
    bias + optional residual add + ReLU are fused into the GEMM epilogue."""
    w, bias = wb
    kh, kw, cin, cout = w.shape
    n, h, wd, c = x.shape
    ho = (h + 2 * padding - kh) // stride + 1
    wo = (wd + 2 * padding - kw) // stride + 1
    if kh == 1 and kw == 1 and padding == 0:
        xs = x if stride == 1 else x[:, ::stride, ::stride, :]
        patches = xs.reshape(n * ho * wo, c)
    else:
        # TODO(synk): im2col for 3x3/7x7 is still materialized in HBM (now bf16); folding
        # it into the GEMM kernel via a K grid axis with shifted-window index_maps is
        # left as future work.
        xp = jnp.pad(x, ((0, 0), (padding, padding), (padding, padding), (0, 0)))
        cols = []
        for i in range(kh):
            for j in range(kw):
                cols.append(lax.slice(
                    xp, (0, i, j, 0),
                    (n, i + (ho - 1) * stride + 1, j + (wo - 1) * stride + 1, c),
                    (1, stride, stride, 1)))
        patches = jnp.stack(cols, axis=3).reshape(n * ho * wo, kh * kw * c)
    res = residual.reshape(n * ho * wo, cout) if residual is not None else None
    out = gemm_bias(patches, w.reshape(kh * kw * cin, cout), bias, relu, res, out_f32)
    return out.reshape(n, ho, wo, cout)


def conv_transpose2d(x, wb, stride, padding, relu, residual=None, out_f32=False):
    """ConvTranspose2d lowered to regular convs.
    stride==1: equivalent dense conv with padding k-1-p (residual fusable).
    stride==2: sub-pixel (output-phase) decomposition -> one small GEMM per phase,
               skipping the ~75% structurally-zero work of the zero-dilated form.
    TODO(synk): the 180-deg spatial kernel flip / (Cin,Cout) axis swap of the PyTorch
    ConvTranspose2d weight is folded into the synthetic iid weight init."""
    w, bias = wb
    kh, kw, cin, cout = w.shape
    if stride == 1:
        return conv2d(x, wb, stride=1, padding=kh - 1 - padding,
                      relu=relu, residual=residual, out_f32=out_f32)
    assert residual is None
    s = stride
    n, h, wd, c = x.shape
    ho = (h - 1) * s + kh - 2 * padding
    wo = (wd - 1) * s + kw - 2 * padding
    pe = kh - 1 - padding                      # effective padding of the dilated input
    out_dtype = jnp.float32 if out_f32 else jnp.bfloat16

    def phase_taps(p, k):
        k0 = next((ki for ki in range(k) if (p + ki - pe) % s == 0), None)
        if k0 is None:
            return None, []
        return k0, [(p + ki - pe) // s for ki in range(k0, k, s)]

    ytaps = [phase_taps(py, kh) for py in range(s)]
    xtaps = [phase_taps(px, kw) for px in range(s)]
    cys = [len(range(py, ho, s)) for py in range(s)]
    cxs = [len(range(px, wo, s)) for px in range(s)]
    cy_full, cx_full = cys[0], cxs[0]

    def pads(taps_list, counts, size):
        lo, hi = 0, 0
        for (k0, dks), cnt in zip(taps_list, counts):
            if k0 is None or cnt == 0 or not dks:
                continue
            lo = max(lo, -min(dks))
            hi = max(hi, cnt - 1 + max(dks) - (size - 1))
        return lo, hi

    pt, pb = pads(ytaps, cys, h)
    pleft, pright = pads(xtaps, cxs, wd)
    xp = jnp.pad(x, ((0, 0), (pt, pb), (pleft, pright), (0, 0)))

    bias_row = jnp.maximum(bias, 0.0) if relu else bias
    phase_rows = []
    for py in range(s):
        ky0, dky = ytaps[py]
        cy = cys[py]
        row = []
        for px in range(s):
            kx0, dkx = xtaps[px]
            cx = cxs[px]
            if cy == 0 or cx == 0:
                ph = jnp.zeros((n, cy_full, cx_full, cout), out_dtype)
            elif ky0 is None or kx0 is None:
                # no kernel tap hits this phase: output is just (relu'd) BN bias
                ph = jnp.broadcast_to(
                    bias_row.reshape(1, 1, 1, cout).astype(out_dtype),
                    (n, cy, cx, cout))
                ph = jnp.pad(ph, ((0, 0), (0, cy_full - cy), (0, cx_full - cx), (0, 0)))
            else:
                cols = []
                for di in dky:
                    for dj in dkx:
                        cols.append(lax.slice(
                            xp, (0, pt + di, pleft + dj, 0),
                            (n, pt + di + cy, pleft + dj + cx, c)))
                patches = jnp.stack(cols, axis=3).reshape(
                    n * cy * cx, len(dky) * len(dkx) * c)
                w_sub = w[ky0::s, kx0::s].reshape(len(dky) * len(dkx) * cin, cout)
                ph = gemm_bias(patches, w_sub, bias, relu, None, out_f32)
                ph = ph.reshape(n, cy, cx, cout)
                ph = jnp.pad(ph, ((0, 0), (0, cy_full - cy), (0, cx_full - cx), (0, 0)))
            row.append(ph)
        phase_rows.append(jnp.stack(row, axis=3))       # (n, cyF, cxF, s, cout)
    out = jnp.stack(phase_rows, axis=2)                 # (n, cyF, s, cxF, s, cout)
    out = out.reshape(n, cy_full * s, cx_full * s, cout)[:, :ho, :wo, :]
    return out


# ----------------------------- parameters -------------------------------------

class _KeyGen:
    def __init__(self, key):
        self.key = key
        self.i = 0

    def __call__(self):
        self.i += 1
        return jax.random.fold_in(self.key, self.i)


def _conv_bn_params(kg, kh, kw, cin, cout):
    std = (2.0 / (kh * kw * cin)) ** 0.5
    w = jax.random.normal(kg(), (kh, kw, cin, cout), jnp.float32) * std
    w = w * BN_SCALE                                   # fold eval-mode BN scale into W
    bias = jnp.zeros((1, cout), jnp.float32)           # eval-mode BN bias (beta=0)
    return (w.astype(jnp.bfloat16), bias)


def build_resnet50_params(kg):
    params = {'stem': _conv_bn_params(kg, 7, 7, 3, 64), 'layers': []}
    in_ch = 64
    for planes, blocks, stride in [(64, 3, 1), (128, 4, 2), (256, 6, 2), (512, 3, 2)]:
        layer = []
        blk_in = in_ch
        for b in range(blocks):
            s = stride if b == 0 else 1
            blk = {
                'c1': _conv_bn_params(kg, 1, 1, blk_in, planes),
                'c2': _conv_bn_params(kg, 3, 3, planes, planes),
                'c3': _conv_bn_params(kg, 1, 1, planes, planes * 4),
                'stride': s,
            }
            if b == 0 and (stride != 1 or blk_in != planes * 4):
                blk['cd'] = _conv_bn_params(kg, 1, 1, blk_in, planes * 4)
            layer.append(blk)
            blk_in = planes * 4
        params['layers'].append(layer)
        in_ch = planes * 4
    return params


def build_resnet50T_params(kg):
    params = {'layers': []}
    in_ch = 2048
    for planes, blocks, stride in [(512, 3, 2), (256, 6, 2), (128, 4, 2), (64, 3, 1)]:
        out_ch = planes * 4 if stride == 1 else planes * 2
        layer = []
        for b in range(blocks):
            last = (b == blocks - 1)
            s = stride if last else 1
            o = out_ch if last else in_ch
            blk = {
                'c1': _conv_bn_params(kg, 1, 1, in_ch, planes),
                'c2': _conv_bn_params(kg, 3, 3, planes, planes),
                'c3': _conv_bn_params(kg, 1, 1, planes, o),
                'stride': s,
            }
            if last and (stride != 1 or o != in_ch):
                blk['cu'] = _conv_bn_params(kg, 1, 1, in_ch, o)
            layer.append(blk)
        params['layers'].append(layer)
        in_ch = out_ch
    params['head'] = _conv_bn_params(kg, 7, 7, in_ch, 3)   # ConvT(256 -> 3, k7, s2, p3)
    return params


def build_params(seed=42):
    kg = _KeyGen(jax.random.PRNGKey(seed))
    params = {
        'rgb': build_resnet50_params(kg),
        'map': build_resnet50T_params(kg),
    }
    # 1x1 fusion conv 4096 -> 2048 (bias=True, no BN)
    w = jax.random.normal(kg(), (1, 1, 4096, 2048), jnp.float32) * (1.0 / 4096.0) ** 0.5
    b = jax.random.normal(kg(), (1, 2048), jnp.float32) * 0.01
    params['fuse'] = (w.astype(jnp.bfloat16), b)
    return params


# ----------------------------- forward passes ---------------------------------

def bottleneck_fwd(x, blk):
    out = conv2d(x, blk['c1'], stride=1, padding=0, relu=True)
    out = conv2d(out, blk['c2'], stride=blk['stride'], padding=1, relu=True)
    identity = conv2d(x, blk['cd'], stride=blk['stride'], padding=0, relu=False) \
        if 'cd' in blk else x
    # residual add + ReLU fused into the conv3 GEMM epilogue
    return conv2d(out, blk['c3'], stride=1, padding=0, relu=True, residual=identity)


def resnet50_fwd(x, params):
    x = conv2d(x, params['stem'], stride=2, padding=3, relu=True)
    x = maxpool_3x3_s2_p1(x)
    for layer in params['layers']:
        for blk in layer:
            x = bottleneck_fwd(x, blk)
    return x


def bottleneckT_fwd(x, blk):
    out = conv_transpose2d(x, blk['c1'], stride=1, padding=0, relu=True)
    out = conv_transpose2d(out, blk['c2'], stride=blk['stride'], padding=1, relu=True)
    identity = conv_transpose2d(x, blk['cu'], stride=blk['stride'], padding=0, relu=False) \
        if 'cu' in blk else x
    # residual add + ReLU fused into the conv3 GEMM epilogue (conv3 is 1x1 / stride 1)
    return conv_transpose2d(out, blk['c3'], stride=1, padding=0, relu=True,
                            residual=identity)


def resnet50T_fwd(x, params):
    for layer in params['layers']:
        for blk in layer:
            x = bottleneckT_fwd(x, blk)
    x = conv_transpose2d(x, params['head'], stride=2, padding=3, relu=True, out_f32=True)
    return x


def deep_conv_net_kumra_map(x_nchw, params):
    # layout: NCHW wrapper input, NHWC inside all kernels; bf16 activations between
    # layers (f32 math inside every kernel), f32 final output.
    x = jnp.transpose(x_nchw, (0, 2, 3, 1)).astype(jnp.bfloat16)
    rgb = x[..., :3]
    d = x[..., 3:4]
    d = jnp.concatenate([d, d, d], axis=-1)
    # NOTE: the reference forward runs BOTH streams through rgb_features.
    rgb_f = l2_normalize(resnet50_fwd(rgb, params['rgb']))
    d_f = l2_normalize(resnet50_fwd(d, params['rgb']))
    feat = jnp.concatenate([rgb_f, d_f], axis=-1)            # torch.cat(dim=1)
    feat = conv2d(feat, params['fuse'], stride=1, padding=0, relu=False)
    out = resnet50T_fwd(feat, params['map'])
    return jnp.transpose(out, (0, 3, 1, 2)).astype(jnp.float32)   # back to NCHW


if __name__ == "__main__":
    params = build_params(seed=42)
    x = jax.random.normal(jax.random.PRNGKey(0), (2, 4, 64, 64), jnp.float32)
    out = deep_conv_net_kumra_map(x, params)
    out = jax.block_until_ready(out)
    assert out.shape == (2, 3, 17, 17), out.shape
    assert bool(jnp.all(jnp.isfinite(out)))
    print("KERNEL_OK")
</pallas_src>

<mosaic_0001>
module attributes {stable_mosaic.version = 11 : i64} {
  func.func @_gemm_kernel(%arg0: i32, %arg1: i32, %arg2: memref<128x147xbf16, #tpu.memory_space<vmem>>, %arg3: memref<147x64xbf16, #tpu.memory_space<vmem>>, %arg4: memref<1x64xf32, #tpu.memory_space<vmem>>, %arg5: memref<128x64xbf16, #tpu.memory_space<vmem>>) attributes {dimension_semantics = [#tpu.dimension_semantics<parallel>, #tpu.dimension_semantics<parallel>], iteration_bounds = array<i64: 16, 1>, scalar_prefetch = 0 : i64, scratch_operands = 0 : i64, tpu.core_type = #tpu.core_type<tc>, window_params = [{transform_indices = @transform_0, window_bounds = array<i64: 128, 147>}, {transform_indices = @transform_1, window_bounds = array<i64: 147, 64>}, {transform_indices = @transform_2, window_bounds = array<i64: 1, 64>}, {transform_indices = @transform_3, window_bounds = array<i64: 128, 64>}]} {
    %c0 = arith.constant 0 : index
    %c0_0 = arith.constant 0 : index
    %0 = vector.load %arg2[%c0, %c0_0] : memref<128x147xbf16, #tpu.memory_space<vmem>>, vector<128x147xbf16>
    %c0_1 = arith.constant 0 : index
    %c0_2 = arith.constant 0 : index
    %1 = vector.load %arg3[%c0_1, %c0_2] : memref<147x64xbf16, #tpu.memory_space<vmem>>, vector<147x64xbf16>
    %cst = arith.constant dense<0.000000e+00> : vector<128x64xf32>
    %2 = tpu.matmul %0, %1, %cst {dimension_numbers = #tpu.dot_dimension_numbers<[1], [0], [0], [1], [0, 0, 1, 1], [], []>} : vector<128x147xbf16>, vector<147x64xbf16>, vector<128x64xf32> -> vector<128x64xf32>
    %c0_3 = arith.constant 0 : index
    %c0_4 = arith.constant 0 : index
    %3 = vector.load %arg4[%c0_3, %c0_4] : memref<1x64xf32, #tpu.memory_space<vmem>>, vector<1x64xf32>
    %4 = vector.broadcast %3 : vector<1x64xf32> to vector<128x64xf32>
    %5 = arith.addf %2, %4 : vector<128x64xf32>
    %cst_5 = arith.constant 0.000000e+00 : f32
    %6 = vector.broadcast %cst_5 : f32 to vector<128x64xf32>
    %7 = arith.maximumf %5, %6 : vector<128x64xf32>
    %8 = arith.truncf %7 : vector<128x64xf32> to vector<128x64xbf16>
    %c0_6 = arith.constant 0 : index
    %c0_7 = arith.constant 0 : index
    %9 = vector.load %arg5[%c0_6, %c0_7] : memref<128x64xbf16, #tpu.memory_space<vmem>>, vector<128x64xbf16>
    tpu.vector_store %arg5[%c0_6, %c0_7], %8 {strides = array<i32>} : memref<128x64xbf16, #tpu.memory_space<vmem>>, vector<128x64xbf16>,
    return
  }
  func.func @transform_0(%arg0: i32, %arg1: i32) -> (i32, i32) {
    %c0_i32 = arith.constant 0 : i32
    %c0_i32_0 = arith.constant 0 : i32
    return %arg0, %c0_i32 : i32, i32
  }
  func.func @transform_1(%arg0: i32, %arg1: i32) -> (i32, i32) {
    %c0_i32 = arith.constant 0 : i32
    %c0_i32_0 = arith.constant 0 : i32
    return %c0_i32, %arg1 : i32, i32
  }
  func.func @transform_2(%arg0: i32, %arg1: i32) -> (i32, i32) {
    %c0_i32 = arith.constant 0 : i32
    %c0_i32_0 = arith.constant 0 : i32
    return %c0_i32, %arg1 : i32, i32
  }
  func.func @transform_3(%arg0: i32, %arg1: i32) -> (i32, i32) {
    %c0_i32 = arith.constant 0 : i32
    return %arg0, %arg1 : i32, i32
  }
}

</mosaic_0001>

<bundles_post_ra>
// kernel: tpu_custom_call.1
= control target key start
LH: loop header
LB: loop body
LE: loop exit
PB: predicated region body
PF: predicated region fallthrough
CT: control target
= control target key end

     0   :  { %s936_s12 = smov 0   ;;  %s938_s13 = smov 0   ;;  %s1084_s0 = inlined_call_operand.vmem [shape: bf16[2048,147], index: 0, kind: input, shape index: {}]   ;;  %s1085_s1 = inlined_call_operand.vmem [shape: bf16[147,64], index: 1, kind: input, shape index: {}]   ;;  %s1086_s2 = inlined_call_operand.vmem [shape: f32[1,64], index: 2, kind: input, shape index: {}]   ;;  %s1087_s3 = inlined_call_operand.vmem [shape: bf16[2048,64], index: 3, kind: output, shape index: {}]  }
   0x1   :  { %s940_s14 = smov 0  }
   0x2 LB: > { %s25_s15 = sadd.s32 1, %s908_s13  ;;  %p734_p0 = scmp.ge.s32.totalorder %s912_s14, 1  ;;  %s912_s14 = sphi %s940_s14, %s13_s14   ;;  %s908_s13 = sphi %s938_s13, %s1089_s13   ;;  %s904_s12 = sphi %s936_s12, %s1088_s12  }
   0x3   : > { %p27_p1 = scmp.ge.s32.totalorder %s25_s15, 16  ;;  %p170_p2 = scmp.lt.s32.totalorder %s912_s14, 17 }
   0x5   : > { %s1091_s15 = smov (%p27_p1, %s25_s15), 0  ;;  %p171_p3 = pnand %p734_p0, %p170_p2 }
   0x6   : > { %v856_v0 = vld [vmem:[%s1085_s1] sm:$0xff] (!%p171_p3)   ;;  %v914_v1 = vmov (!%p171_p3), 0   ;;  %v857_v2 = vld [vmem:[%s1085_s1 + $0x8] sm:$0xff] (!%p171_p3)   ;;  %v858_v3 = vld [vmem:[%s1085_s1 + $0x10] sm:$0xff] (!%p171_p3)   ;;  %s735_s22 = sshll.u32 (!%p171_p3), %s904_s12, 4  ;;  %vm400_vm0 = vcmask (!%p171_p3), 154624  }
   0x7   : > { %174 = sbr.rel (%p171_p3) target bundleno = 292 (0x124), region = 32  ;;  %432 = vmatprep.subr.bf16.mxu0 (!%p171_p3), %v914_v1  ;;  %810 = vmatprep.subr.bf16.mxu1 (!%p171_p3), %v914_v1  ;;  %p206_p4 = scmp.lt.s32.totalorder (!%p171_p3), %s735_s22, 255  ;;  %v859_v4 = vld [vmem:[%s1085_s1 + $0x18] sm:$0xff] (!%p171_p3)   ;;  %v860_v5 = vld [vmem:[%s1085_s1 + $0x20] sm:$0xff] (!%p171_p3)   ;;  %v861_v8 = vld [vmem:[%s1085_s1 + $0x28] sm:$0xff] (!%p171_p3)   ;;  %vm425_vm1 = vcmask (!%p171_p3), 1040384  }
   0x8   : > { %433 = vmatpush1.bf16.msra.mxu0 (!%p171_p3), %v856_v0  ;;  %820 = vmatpush1.bf16.msra.mxu1 (!%p171_p3), %v856_v0  ;;  %v862_v9 = vld [vmem:[%s1085_s1 + $0x30] sm:$0xff] (!%p171_p3)   ;;  %v863_v10 = vld [vmem:[%s1085_s1 + $0x38] sm:$0xff] (!%p171_p3)   ;;  %vm426_vm2 = vcmask (!%p171_p3), 1041408   ;;  %v915_v11 = vmov (!%p171_p3), 65535   ;;  %v864_v13 = vld [vmem:[%s1085_s1 + $0x40] sm:$0xff] (!%p171_p3)   ;;  %vm609_vm3 = vcmask (!%p171_p3), 519168  }
   0x9   : > { %434 = vmatprep.subr.bf16.mxu0 (!%p171_p3), %v914_v1  ;;  %811 = vmatprep.subr.bf16.mxu1 (!%p171_p3), %v914_v1  ;;  %v427_v12 = vsel (!%p171_p3), %vm425_vm1, 4294967295, %v915_v11  ;;  %v865_v14 = vld [vmem:[%s1085_s1 + $0x48] ss:$0 sps:$4 sm:$0x33] (!%p171_p3)   ;;  %v1019_v31 = vld [vmem:[%s1086_s2] ss:$0 sm:$0xff] (!%p171_p3) }
   0xa   : > { %v428_v15 = vsel (!%p171_p3), %vm426_vm2, %v427_v12, 0 }
   0xb   : > { %v430_v16 = vand.u32 (!%p171_p3), %v865_v14, %v428_v15 }
   0xc   : > { %435 = vmatpush1.bf16.msra.mxu0 (!%p171_p3), %v857_v2  ;;  %821 = vmatpush1.bf16.msra.mxu1 (!%p171_p3), %v857_v2 }
   0xd   : > { %436 = vmatprep.subr.bf16.mxu0 (!%p171_p3), %v914_v1  ;;  %812 = vmatprep.subr.bf16.mxu1 (!%p171_p3), %v914_v1 }
   0xe   : > { %s1093_s22 = smov (!%p206_p4, %s735_s22), 255 }
   0xf   : > { %s793_s25 = sshll.u32 %s1093_s22, 3  ;;  %s739_s19 = sshll.u32 %s1093_s22, 2 }
  0x10   : > { %437 = vmatpush1.bf16.msra.mxu0 %v858_v3  ;;  %822 = vmatpush1.bf16.msra.mxu1 %v858_v3  ;;  %s972_s28 = scalar_lea.vmem %s1084_s0, %s793_s25  ;;  %s1029_s22 = scalar_lea.vmem %s1087_s3, %s739_s19 }
  0x11   : > { %438 = vmatprep.subr.bf16.mxu0 %v914_v1  ;;  %813 = vmatprep.subr.bf16.mxu1 %v914_v1  ;;  %v868_v6 = vld [vmem:[%s972_s28 + $0x4] ss:$8 sps:$4 sm:$0xff]   ;;  %v866_v17 = vld [vmem:[%s972_s28] ss:$8 sps:$4 sm:$0xff]   ;;  %v872_v19 = vld [vmem:[%s972_s28 + $0x14] ss:$8 sps:$4 sm:$0xff]  }
  0x12   : > { %v871_v7 = vld [vmem:[%s972_s28 + $0x44] ss:$8 sps:$4 sm:$0xff]   ;;  %767 = vmatprep.mubr.msk.bf16.mxu0 %vm400_vm0, %v868_v6  ;;  %v869_v18 = vld [vmem:[%s972_s28 + $0x40] ss:$8 sps:$4 sm:$0xff]   ;;  %v874_v20 = vld [vmem:[%s972_s28 + $0x54] ss:$8 sps:$4 sm:$0xff]  }
  0x13   : > { %771 = vmatprep.mubr.msk.bf16.mxu1 %vm400_vm0, %v871_v7  ;;  %v876_v21 = vld [vmem:[%s972_s28 + $0x10] ss:$8 sps:$4 sm:$0xff]   ;;  %v878_v23 = vld [vmem:[%s972_s28 + $0x24] ss:$8 sps:$4 sm:$0xff]   ;;  %v882_v25 = vld [vmem:[%s972_s28 + $0x20] ss:$8 sps:$4 sm:$0xff]  }
  0x14   : > { %439 = vmatpush1.bf16.msra.mxu0 %v859_v4  ;;  %823 = vmatpush1.bf16.msra.mxu1 %v859_v4  ;;  %v877_v22 = vld [vmem:[%s972_s28 + $0x50] ss:$8 sps:$4 sm:$0xff]   ;;  %v880_v24 = vld [vmem:[%s972_s28 + $0x64] ss:$8 sps:$4 sm:$0xff]   ;;  %v883_v26 = vld [vmem:[%s972_s28 + $0x60] ss:$8 sps:$4 sm:$0xff]  }
  0x15   : > { %440 = vmatprep.subr.bf16.mxu0 %v914_v1  ;;  %814 = vmatprep.subr.bf16.mxu1 %v914_v1  ;;  %v884_v27 = vld [vmem:[%s972_s28 + $0x34] ss:$8 sps:$4 sm:$0xff]   ;;  %v888_v29 = vld [vmem:[%s972_s28 + $0x30] ss:$8 sps:$4 sm:$0xff]  }
  0x16   : > { %v886_v28 = vld [vmem:[%s972_s28 + $0x74] ss:$8 sps:$4 sm:$0xff]   ;;  %v889_v30 = vld [vmem:[%s972_s28 + $0x70] ss:$8 sps:$4 sm:$0xff]  }
  0x18   : > { %441 = vmatpush1.bf16.msra.mxu0 %v860_v5  ;;  %824 = vmatpush1.bf16.msra.mxu1 %v860_v5 }
  0x19   : > { %442 = vmatprep.subr.bf16.mxu0 %v914_v1  ;;  %815 = vmatprep.subr.bf16.mxu1 %v914_v1 }
  0x1c   : > { %443 = vmatpush1.bf16.msra.mxu0 %v861_v8  ;;  %825 = vmatpush1.bf16.msra.mxu1 %v861_v8 }
  0x1d   : > { %444 = vmatprep.subr.bf16.mxu0 %v914_v1  ;;  %816 = vmatprep.subr.bf16.mxu1 %v914_v1 }
  0x20   : > { %445 = vmatpush1.bf16.msra.mxu0 %v862_v9  ;;  %826 = vmatpush1.bf16.msra.mxu1 %v862_v9 }
  0x21   : > { %446 = vmatprep.subr.bf16.mxu0 %v914_v1  ;;  %817 = vmatprep.subr.bf16.mxu1 %v914_v1 }
  0x24   : > { %447 = vmatpush1.bf16.msra.mxu0 %v863_v10  ;;  %827 = vmatpush1.bf16.msra.mxu1 %v863_v10 }
  0x25   : > { %448 = vmatprep.subr.bf16.mxu0 %v914_v1  ;;  %818 = vmatprep.subr.bf16.mxu1 %v914_v1 }
  0x28   : > { %449 = vmatpush1.bf16.msra.mxu0 %v864_v13  ;;  %828 = vmatpush1.bf16.msra.mxu1 %v864_v13 }
  0x29   : > { %450 = vmatprep.subr.bf16.mxu0 %v914_v1  ;;  %819 = vmatprep.subr.bf16.mxu1 %v914_v1 }
  0x2c   : > { %451 = vmatpush1.bf16.msra.mxu0 %v430_v16  ;;  %829 = vmatpush1.bf16.msra.mxu1 %v430_v16 }
  0x2f   : > { %465 = vmatmul.mubr.bf16.vlgmr.msra.gmra.mrb[0].mxu0 %v866_v17  ;;  %497 = vmatmul.mubr.bf16.vlgmr.msra.gmra.mrb[0].mxu1 %v869_v18 }
  0x30   : > { %768 = vmatprep.mubr.msk.bf16.mxu0 %vm400_vm0, %v872_v19  ;;  %772 = vmatprep.mubr.msk.bf16.mxu1 %vm400_vm0, %v874_v20 }
  0x37   : > { %473 = vmatmul.mubr.bf16.gmra.mrb[4].mxu0 %v876_v21  ;;  %505 = vmatmul.mubr.bf16.gmra.mrb[4].mxu1 %v877_v22 }
  0x38   : > { %769 = vmatprep.mubr.msk.bf16.mxu0 %vm400_vm0, %v878_v23  ;;  %773 = vmatprep.mubr.msk.bf16.mxu1 %vm400_vm0, %v880_v24 }
  0x3f   : > { %481 = vmatmul.mubr.bf16.gmra.mrb[8].mxu0 %v882_v25  ;;  %513 = vmatmul.mubr.bf16.gmra.mrb[8].mxu1 %v883_v26 }
  0x40   : > { %770 = vmatprep.mubr.msk.bf16.mxu0 %vm400_vm0, %v884_v27  ;;  %774 = vmatprep.mubr.msk.bf16.mxu1 %vm400_vm0, %v886_v28 }
  0x47   : > { %489 = vmatmul.mubr.bf16.gmra.mrb[12].mxu0 %v888_v29  ;;  %521 = vmatmul.mubr.bf16.gmra.mrb[12].mxu1 %v889_v30 }
 0x102   : > { %v466_v32 = vpop.f32.mrb[0].mxu0  ;;  %v498_v33 = vpop.f32.mrb[0].mxu1 }
 0x103   : > { %v467_v34 = vadd.f32 %v1019_v31, %v466_v32  ;;  %v499_v35 = vadd.f32 %v1019_v31, %v498_v33  ;;  %v468_v36 = vpop.f32.mrb[1].mxu0  ;;  %v500_v37 = vpop.f32.mrb[1].mxu1 }
 0x104   : > { %v469_v38 = vpop.f32.mrb[2].mxu0  ;;  %v501_v39 = vpop.f32.mrb[2].mxu1 }
 0x105   : > { %v529_v40 = vmax.f32 %v467_v34, 0.0  ;;  %v537_v41 = vmax.f32 %v499_v35, 0.0  ;;  %v470_v42 = vadd.f32 %v1019_v31, %v469_v38  ;;  %v502_v43 = vadd.f32 %v1019_v31, %v501_v39  ;;  %v471_v44 = vpop.f32.mrb[3].mxu0  ;;  %v503_v45 = vpop.f32.mrb[3].mxu1 }
 0x107   : > { %v794_v46 = vpack.c.bf16 %v529_v40, %v529_v40  ;;  %v802_v47 = vpack.c.bf16 %v537_v41, %v537_v41  ;;  %v530_v48 = vmax.f32 %v470_v42, 0.0  ;;  %v538_v49 = vmax.f32 %v502_v43, 0.0 }
 0x109   : > { %610 = vst.msk [vmem:[%s1029_s22] sm:$0xf] %vm609_vm3, %v794_v46  ;;  %618 = vst.msk [vmem:[%s1029_s22 + $0x20] sm:$0xf] %vm609_vm3, %v802_v47  ;;  %v795_v50 = vpack.c.bf16 %v530_v48, %v530_v48  ;;  %v803_v51 = vpack.c.bf16 %v538_v49, %v538_v49 }
 0x10a   : > { %v474_v52 = vpop.f32.mrb[4].mxu0  ;;  %v506_v53 = vpop.f32.mrb[4].mxu1 }
 0x10b   : > { %611 = vst.msk [vmem:[%s1029_s22 + $0x4] sm:$0xf] %vm609_vm3, %v795_v50  ;;  %619 = vst.msk [vmem:[%s1029_s22 + $0x24] sm:$0xf] %vm609_vm3, %v803_v51  ;;  %v475_v54 = vadd.f32 %v1019_v31, %v474_v52  ;;  %v507_v55 = vadd.f32 %v1019_v31, %v506_v53  ;;  %v476_v56 = vpop.f32.mrb[5].mxu0  ;;  %v508_v57 = vpop.f32.mrb[5].mxu1 }
 0x10c   : > { %v477_v58 = vpop.f32.mrb[6].mxu0  ;;  %v509_v59 = vpop.f32.mrb[6].mxu1 }
 0x10d   : > { %v531_v60 = vmax.f32 %v475_v54, 0.0  ;;  %v539_v61 = vmax.f32 %v507_v55, 0.0  ;;  %v478_v62 = vadd.f32 %v1019_v31, %v477_v58  ;;  %v510_v63 = vadd.f32 %v1019_v31, %v509_v59  ;;  %v479_v0 = vpop.f32.mrb[7].mxu0  ;;  %v511_v1 = vpop.f32.mrb[7].mxu1 }
 0x10f   : > { %v796_v2 = vpack.c.bf16 %v531_v60, %v531_v60  ;;  %v804_v3 = vpack.c.bf16 %v539_v61, %v539_v61  ;;  %v532_v4 = vmax.f32 %v478_v62, 0.0  ;;  %v540_v5 = vmax.f32 %v510_v63, 0.0 }
 0x111   : > { %612 = vst.msk [vmem:[%s1029_s22 + $0x8] sm:$0xf] %vm609_vm3, %v796_v2  ;;  %620 = vst.msk [vmem:[%s1029_s22 + $0x28] sm:$0xf] %vm609_vm3, %v804_v3  ;;  %v797_v6 = vpack.c.bf16 %v532_v4, %v532_v4  ;;  %v805_v7 = vpack.c.bf16 %v540_v5, %v540_v5 }
 0x112   : > { %v482_v8 = vpop.f32.mrb[8].mxu0  ;;  %v514_v9 = vpop.f32.mrb[8].mxu1 }
 0x113   : > { %613 = vst.msk [vmem:[%s1029_s22 + $0xc] sm:$0xf] %vm609_vm3, %v797_v6  ;;  %621 = vst.msk [vmem:[%s1029_s22 + $0x2c] sm:$0xf] %vm609_vm3, %v805_v7  ;;  %v483_v10 = vadd.f32 %v1019_v31, %v482_v8  ;;  %v515_v11 = vadd.f32 %v1019_v31, %v514_v9  ;;  %v484_v12 = vpop.f32.mrb[9].mxu0  ;;  %v516_v13 = vpop.f32.mrb[9].mxu1 }
 0x114   : > { %v485_v14 = vpop.f32.mrb[10].mxu0  ;;  %v517_v15 = vpop.f32.mrb[10].mxu1 }
 0x115   : > { %v533_v16 = vmax.f32 %v483_v10, 0.0  ;;  %v541_v17 = vmax.f32 %v515_v11, 0.0  ;;  %v486_v18 = vadd.f32 %v1019_v31, %v485_v14  ;;  %v518_v19 = vadd.f32 %v1019_v31, %v517_v15  ;;  %v487_v20 = vpop.f32.mrb[11].mxu0  ;;  %v519_v21 = vpop.f32.mrb[11].mxu1 }
 0x117   : > { %v798_v22 = vpack.c.bf16 %v533_v16, %v533_v16  ;;  %v806_v23 = vpack.c.bf16 %v541_v17, %v541_v17  ;;  %v534_v24 = vmax.f32 %v486_v18, 0.0  ;;  %v542_v25 = vmax.f32 %v518_v19, 0.0 }
 0x119   : > { %614 = vst.msk [vmem:[%s1029_s22 + $0x10] sm:$0xf] %vm609_vm3, %v798_v22  ;;  %622 = vst.msk [vmem:[%s1029_s22 + $0x30] sm:$0xf] %vm609_vm3, %v806_v23  ;;  %v799_v26 = vpack.c.bf16 %v534_v24, %v534_v24  ;;  %v807_v27 = vpack.c.bf16 %v542_v25, %v542_v25 }
 0x11a   : > { %v490_v28 = vpop.f32.mrb[12].mxu0  ;;  %v522_v29 = vpop.f32.mrb[12].mxu1 }
 0x11b   : > { %615 = vst.msk [vmem:[%s1029_s22 + $0x14] sm:$0xf] %vm609_vm3, %v799_v26  ;;  %623 = vst.msk [vmem:[%s1029_s22 + $0x34] sm:$0xf] %vm609_vm3, %v807_v27  ;;  %v491_v30 = vadd.f32 %v1019_v31, %v490_v28  ;;  %v523_v32 = vadd.f32 %v1019_v31, %v522_v29  ;;  %v492_v33 = vpop.f32.mrb[13].mxu0  ;;  %v524_v34 = vpop.f32.mrb[13].mxu1 }
 0x11c   : > { %v493_v35 = vpop.f32.mrb[14].mxu0  ;;  %v525_v36 = vpop.f32.mrb[14].mxu1 }
 0x11d   : > { %v535_v37 = vmax.f32 %v491_v30, 0.0  ;;  %v543_v38 = vmax.f32 %v523_v32, 0.0  ;;  %v494_v39 = vadd.f32 %v1019_v31, %v493_v35  ;;  %v526_v40 = vadd.f32 %v1019_v31, %v525_v36  ;;  %v495_v41 = vpop.f32.mrb[15].mxu0  ;;  %v527_v42 = vpop.f32.mrb[15].mxu1 }
 0x11f   : > { %v800_v43 = vpack.c.bf16 %v535_v37, %v535_v37  ;;  %v808_v44 = vpack.c.bf16 %v543_v38, %v543_v38  ;;  %v536_v45 = vmax.f32 %v494_v39, 0.0  ;;  %v544_v46 = vmax.f32 %v526_v40, 0.0 }
 0x121   : > { %616 = vst.msk [vmem:[%s1029_s22 + $0x18] sm:$0xf] %vm609_vm3, %v800_v43  ;;  %624 = vst.msk [vmem:[%s1029_s22 + $0x38] sm:$0xf] %vm609_vm3, %v808_v44  ;;  %v801_v47 = vpack.c.bf16 %v536_v45, %v536_v45  ;;  %v809_v48 = vpack.c.bf16 %v544_v46, %v544_v46 }
 0x123   : > { %617 = vst.msk [vmem:[%s1029_s22 + $0x1c] sm:$0xf] %vm609_vm3, %v801_v47  ;;  %625 = vst.msk [vmem:[%s1029_s22 + $0x3c] sm:$0xf] %vm609_vm3, %v809_v48 }
 0x124 PF: > { %s13_s14 = sadd.s32 1, %s912_s14   ;;  %s1088_s12 = smov %s908_s13 }
 0x125   : > { %p10_p5 = scmp.ge.s32.totalorder %s13_s14, 18   ;;  %s1089_s13 = smov %s1091_s15 }
 0x127   :  { %12 = sbr.rel (!%p10_p5) target bundleno = 2 (0x2), region = 68 }

</bundles_post_ra>
